<compile_context>
chip_gen: v7x
topology: tpu7x:2x2x1
jax: 0.10.0
libtpu: 0.0.40
codegen_flags: <defaults>
</compile_context>

<pallas_src>
import functools

import jax
import jax.numpy as jnp
from jax import lax
from jax.experimental import pallas as pl
from jax.experimental.pallas import tpu as pltpu

N_EMBD = 384      # module constant
HEAD_DIM = 64     # head_dim (MXU-friendly)
BLOCK_SIZE = 256  # causal mask horizon (T <= BLOCK_SIZE)


def _head_kernel(xq_ref, xkv_ref, wq_ref, wk_ref, wv_ref, o_ref, *, tq):
    # xq_ref:  (1, tq, C)  query tile of x
    # xkv_ref: (1, T,  C)  full sequence of x (for K/V)
    # w*_ref:  (C, H)
    # o_ref:   (1, tq, H)
    qi = pl.program_id(1)

    xq = xq_ref[0].astype(jnp.bfloat16)      # (tq, C)
    xkv = xkv_ref[0].astype(jnp.bfloat16)    # (T, C)
    wq = wq_ref[...].astype(jnp.bfloat16)    # (C, H)
    wk = wk_ref[...].astype(jnp.bfloat16)
    wv = wv_ref[...].astype(jnp.bfloat16)

    T = xkv.shape[0]
    H = wq.shape[1]
    scale = float(H) ** -0.5

    # Projections: bf16 operands, f32 accumulation.  Scale folded into q.
    q = jnp.dot(xq, wq, preferred_element_type=jnp.float32) * scale    # (tq, H)
    k = jnp.dot(xkv, wk, preferred_element_type=jnp.float32)           # (T, H)
    v = jnp.dot(xkv, wv, preferred_element_type=jnp.float32)           # (T, H)

    # Scores: contract the head dim of q and k directly (no explicit transpose).
    s = lax.dot_general(
        q.astype(jnp.bfloat16), k.astype(jnp.bfloat16),
        dimension_numbers=(((1,), (1,)), ((), ())),
        preferred_element_type=jnp.float32)                            # (tq, T)

    # Causal mask built from small iotas; broadcast compare makes the (tq, T) mask.
    q_start = qi * tq
    row = q_start + lax.broadcasted_iota(jnp.int32, (tq, 1), 0)        # (tq, 1)
    col = lax.broadcasted_iota(jnp.int32, (1, T), 1)                   # (1, T)
    s = jnp.where(col <= row, s, -jnp.inf)  # diagonal always unmasked -> no NaN rows

    # Numerically stable softmax; normalize after the value matmul (tq*H mults).
    m = jnp.max(s, axis=-1, keepdims=True)                             # (tq, 1)
    p = jnp.exp(s - m)                                                 # (tq, T)
    denom = jnp.sum(p, axis=-1, keepdims=True)                         # (tq, 1)

    out = jnp.dot(p.astype(jnp.bfloat16), v.astype(jnp.bfloat16),
                  preferred_element_type=jnp.float32)                  # (tq, H)
    out = out * pl.reciprocal(denom, approx=True)

    # NOTE: last dim H=64 < 128 -> masked stores; lane-dense output would need
    # multi-head fusion in the caller.  Output volume is small, so acceptable here.
    o_ref[0] = out.astype(o_ref.dtype)


def head_forward(x, w_q, w_k, w_v, *, tq=128):
    """x: (B, T, C) float32; w_*: (C, H) float32. Returns (B, T, H)."""
    B, T, C = x.shape
    H = w_q.shape[1]
    assert C == w_q.shape[0] == w_k.shape[0] == w_v.shape[0]
    assert T <= BLOCK_SIZE
    assert T % 8 == 0, "sequence length must be a multiple of 8 (sublane tiling)"

    tq = min(tq, T)
    assert T % tq == 0
    n_q = T // tq

    kernel = functools.partial(_head_kernel, tq=tq)

    return pl.pallas_call(
        kernel,
        out_shape=jax.ShapeDtypeStruct((B, T, H), x.dtype),
        grid=(B, n_q),
        in_specs=[
            pl.BlockSpec((1, tq, C), lambda b, qi: (b, qi, 0)),  # query tile of x
            pl.BlockSpec((1, T, C), lambda b, qi: (b, 0, 0)),    # full seq for K/V
            pl.BlockSpec((C, H), lambda b, qi: (0, 0)),
            pl.BlockSpec((C, H), lambda b, qi: (0, 0)),
            pl.BlockSpec((C, H), lambda b, qi: (0, 0)),
        ],
        out_specs=pl.BlockSpec((1, tq, H), lambda b, qi: (b, qi, 0)),
        compiler_params=pltpu.CompilerParams(
            dimension_semantics=("parallel", "parallel")),
    )(x, x, w_q, w_k, w_v)


def reference_forward(x, w_q, w_k, w_v):
    """Pure-JAX fp32 reference matching the PyTorch forward (eval mode)."""
    B, T, C = x.shape
    H = w_q.shape[1]
    q = x @ w_q
    k = x @ w_k
    v = x @ w_v
    wei = (q @ jnp.swapaxes(k, -2, -1)) * (H ** -0.5)
    tril = jnp.tril(jnp.ones((T, T), dtype=bool))
    wei = jnp.where(tril, wei, -jnp.inf)
    wei = jax.nn.softmax(wei, axis=-1)
    return wei @ v


if __name__ == "__main__":
    key = jax.random.PRNGKey(0)
    kx, kq, kk, kv = jax.random.split(key, 4)

    B, C, H = 2, N_EMBD, HEAD_DIM

    # deterministic synthetic weights (nn.Linear(n_embd, head_dim, bias=False)
    # has weight (H, C); we store the transposed (C, H) layout directly)
    init_scale = C ** -0.5
    w_q = jax.random.normal(kq, (C, H), dtype=jnp.float32) * init_scale
    w_k = jax.random.normal(kk, (C, H), dtype=jnp.float32) * init_scale
    w_v = jax.random.normal(kv, (C, H), dtype=jnp.float32) * init_scale

    # Small seq (single query tile) and full block_size (exercises multi-tile path).
    for T in (8, BLOCK_SIZE):
        x = jax.random.normal(jax.random.fold_in(kx, T), (B, T, C),
                              dtype=jnp.float32)
        out = jax.block_until_ready(head_forward(x, w_q, w_k, w_v))
        ref = reference_forward(x, w_q, w_k, w_v)
        assert out.shape == (B, T, H)
        # bf16 MXU operands with f32 accumulation -> loose tolerance vs fp32 ref.
        assert jnp.allclose(out, ref, atol=5e-2, rtol=5e-2), (
            f"T={T}: mismatch vs reference, max abs err "
            f"{float(jnp.max(jnp.abs(out - ref)))}")

    print("KERNEL_OK")
</pallas_src>

<mosaic_0001>
module attributes {stable_mosaic.version = 11 : i64} {
  func.func @_head_kernel(%arg0: i32, %arg1: i32, %arg2: memref<1x8x384xf32, #tpu.memory_space<vmem>>, %arg3: memref<1x8x384xf32, #tpu.memory_space<vmem>>, %arg4: memref<384x64xf32, #tpu.memory_space<vmem>>, %arg5: memref<384x64xf32, #tpu.memory_space<vmem>>, %arg6: memref<384x64xf32, #tpu.memory_space<vmem>>, %arg7: memref<1x8x64xf32, #tpu.memory_space<vmem>>) attributes {dimension_semantics = [#tpu.dimension_semantics<parallel>, #tpu.dimension_semantics<parallel>], iteration_bounds = array<i64: 2, 1>, scalar_prefetch = 0 : i64, scratch_operands = 0 : i64, tpu.core_type = #tpu.core_type<tc>, window_params = [{transform_indices = @transform_0, window_bounds = array<i64: 1, 8, 384>}, {transform_indices = @transform_1, window_bounds = array<i64: 1, 8, 384>}, {pipeline_mode = #tpu.pipeline_mode<synchronous>, transform_indices = @transform_2, window_bounds = array<i64: 384, 64>}, {pipeline_mode = #tpu.pipeline_mode<synchronous>, transform_indices = @transform_3, window_bounds = array<i64: 384, 64>}, {pipeline_mode = #tpu.pipeline_mode<synchronous>, transform_indices = @transform_4, window_bounds = array<i64: 384, 64>}, {transform_indices = @transform_5, window_bounds = array<i64: 1, 8, 64>}]} {
    %c0 = arith.constant 0 : index
    %c0_0 = arith.constant 0 : index
    %c0_1 = arith.constant 0 : index
    %0 = vector.load %arg2[%c0, %c0_0, %c0_1] : memref<1x8x384xf32, #tpu.memory_space<vmem>>, vector<1x8x384xf32>
    %1 = vector.shape_cast %0 : vector<1x8x384xf32> to vector<8x384xf32>
    %2 = arith.truncf %1 : vector<8x384xf32> to vector<8x384xbf16>
    %c0_2 = arith.constant 0 : index
    %c0_3 = arith.constant 0 : index
    %c0_4 = arith.constant 0 : index
    %3 = vector.load %arg3[%c0_2, %c0_3, %c0_4] : memref<1x8x384xf32, #tpu.memory_space<vmem>>, vector<1x8x384xf32>
    %4 = vector.shape_cast %3 : vector<1x8x384xf32> to vector<8x384xf32>
    %5 = arith.truncf %4 : vector<8x384xf32> to vector<8x384xbf16>
    %c0_5 = arith.constant 0 : index
    %c0_6 = arith.constant 0 : index
    %6 = vector.load %arg4[%c0_5, %c0_6] : memref<384x64xf32, #tpu.memory_space<vmem>>, vector<384x64xf32>
    %7 = arith.truncf %6 : vector<384x64xf32> to vector<384x64xbf16>
    %c0_7 = arith.constant 0 : index
    %c0_8 = arith.constant 0 : index
    %8 = vector.load %arg5[%c0_7, %c0_8] : memref<384x64xf32, #tpu.memory_space<vmem>>, vector<384x64xf32>
    %9 = arith.truncf %8 : vector<384x64xf32> to vector<384x64xbf16>
    %c0_9 = arith.constant 0 : index
    %c0_10 = arith.constant 0 : index
    %10 = vector.load %arg6[%c0_9, %c0_10] : memref<384x64xf32, #tpu.memory_space<vmem>>, vector<384x64xf32>
    %11 = arith.truncf %10 : vector<384x64xf32> to vector<384x64xbf16>
    %cst = arith.constant dense<0.000000e+00> : vector<8x64xf32>
    %12 = tpu.matmul %2, %7, %cst {dimension_numbers = #tpu.dot_dimension_numbers<[1], [0], [0], [1], [0, 0, 1, 1], [], []>} : vector<8x384xbf16>, vector<384x64xbf16>, vector<8x64xf32> -> vector<8x64xf32>
    %cst_11 = arith.constant 1.250000e-01 : f32
    %13 = vector.broadcast %cst_11 : f32 to vector<8x64xf32>
    %14 = arith.mulf %12, %13 : vector<8x64xf32>
    %cst_12 = arith.constant dense<0.000000e+00> : vector<8x64xf32>
    %15 = tpu.matmul %5, %9, %cst_12 {dimension_numbers = #tpu.dot_dimension_numbers<[1], [0], [0], [1], [0, 0, 1, 1], [], []>} : vector<8x384xbf16>, vector<384x64xbf16>, vector<8x64xf32> -> vector<8x64xf32>
    %cst_13 = arith.constant dense<0.000000e+00> : vector<8x64xf32>
    %16 = tpu.matmul %5, %11, %cst_13 {dimension_numbers = #tpu.dot_dimension_numbers<[1], [0], [0], [1], [0, 0, 1, 1], [], []>} : vector<8x384xbf16>, vector<384x64xbf16>, vector<8x64xf32> -> vector<8x64xf32>
    %17 = arith.truncf %14 : vector<8x64xf32> to vector<8x64xbf16>
    %18 = arith.truncf %15 : vector<8x64xf32> to vector<8x64xbf16>
    %cst_14 = arith.constant dense<0.000000e+00> : vector<8x8xf32>
    %19 = tpu.matmul %17, %18, %cst_14 {dimension_numbers = #tpu.dot_dimension_numbers<[1], [1], [0], [0], [0, 0, 1, 0], [], []>} : vector<8x64xbf16>, vector<8x64xbf16>, vector<8x8xf32> -> vector<8x8xf32>
    %c8_i32 = arith.constant 8 : i32
    %20 = arith.muli %arg1, %c8_i32 : i32
    %21 = tpu.iota {dimensions = array<i32: 0>} : vector<8x1xi32>
    %22 = vector.broadcast %20 : i32 to vector<8x1xi32>
    %23 = arith.addi %22, %21 : vector<8x1xi32>
    %24 = tpu.iota {dimensions = array<i32: 1>} : vector<1x8xi32>
    %25 = vector.broadcast %24 : vector<1x8xi32> to vector<8x8xi32>
    %26 = vector.broadcast %23 : vector<8x1xi32> to vector<8x8xi32>
    %27 = arith.cmpi sle, %25, %26 : vector<8x8xi32>
    %cst_15 = arith.constant 0xFF800000 : f32
    %28 = vector.broadcast %cst_15 : f32 to vector<8x8xf32>
    %29 = arith.select %27, %19, %28 : vector<8x8xi1>, vector<8x8xf32>
    %cst_16 = arith.constant dense<0xFF800000> : vector<8xf32>
    %30 = vector.multi_reduction <maximumf>, %29, %cst_16 [1] : vector<8x8xf32> to vector<8xf32>
    %31 = vector.shape_cast %30 : vector<8xf32> to vector<8x1xf32>
    %32 = vector.broadcast %31 : vector<8x1xf32> to vector<8x8xf32>
    %33 = arith.subf %29, %32 : vector<8x8xf32>
    %34 = math.exp %33 : vector<8x8xf32>
    %cst_17 = arith.constant dense<0.000000e+00> : vector<8xf32>
    %35 = vector.multi_reduction <add>, %34, %cst_17 [1] : vector<8x8xf32> to vector<8xf32>
    %36 = vector.shape_cast %35 : vector<8xf32> to vector<8x1xf32>
    %37 = arith.truncf %34 : vector<8x8xf32> to vector<8x8xbf16>
    %38 = arith.truncf %16 : vector<8x64xf32> to vector<8x64xbf16>
    %cst_18 = arith.constant dense<0.000000e+00> : vector<8x64xf32>
    %39 = tpu.matmul %37, %38, %cst_18 {dimension_numbers = #tpu.dot_dimension_numbers<[1], [0], [0], [1], [0, 0, 1, 1], [], []>} : vector<8x8xbf16>, vector<8x64xbf16>, vector<8x64xf32> -> vector<8x64xf32>
    %40 = tpu.reciprocal %36 {approx = true} : vector<8x1xf32> -> vector<8x1xf32>
    %41 = vector.broadcast %40 : vector<8x1xf32> to vector<8x64xf32>
    %42 = arith.mulf %39, %41 : vector<8x64xf32>
    %c0_19 = arith.constant 0 : index
    %c0_20 = arith.constant 0 : index
    %c0_21 = arith.constant 0 : index
    %43 = vector.load %arg7[%c0_19, %c0_20, %c0_21] : memref<1x8x64xf32, #tpu.memory_space<vmem>>, vector<1x8x64xf32>
    %44 = vector.shape_cast %43 : vector<1x8x64xf32> to vector<8x64xf32>
    %45 = vector.shape_cast %42 : vector<8x64xf32> to vector<1x8x64xf32>
    tpu.vector_store %arg7[%c0_19, %c0_20, %c0_21], %45 {strides = array<i32>} : memref<1x8x64xf32, #tpu.memory_space<vmem>>, vector<1x8x64xf32>,
    return
  }
  func.func @transform_0(%arg0: i32, %arg1: i32) -> (i32, i32, i32) {
    %c0_i32 = arith.constant 0 : i32
    %c0_i32_0 = arith.constant 0 : i32
    return %arg0, %arg1, %c0_i32 : i32, i32, i32
  }
  func.func @transform_1(%arg0: i32, %arg1: i32) -> (i32, i32, i32) {
    %c0_i32 = arith.constant 0 : i32
    %c0_i32_0 = arith.constant 0 : i32
    %c0_i32_1 = arith.constant 0 : i32
    return %arg0, %c0_i32, %c0_i32_0 : i32, i32, i32
  }
  func.func @transform_2(%arg0: i32, %arg1: i32) -> (i32, i32) {
    %c0_i32 = arith.constant 0 : i32
    %c0_i32_0 = arith.constant 0 : i32
    %c0_i32_1 = arith.constant 0 : i32
    return %c0_i32, %c0_i32_0 : i32, i32
  }
  func.func @transform_3(%arg0: i32, %arg1: i32) -> (i32, i32) {
    %c0_i32 = arith.constant 0 : i32
    %c0_i32_0 = arith.constant 0 : i32
    %c0_i32_1 = arith.constant 0 : i32
    return %c0_i32, %c0_i32_0 : i32, i32
  }
  func.func @transform_4(%arg0: i32, %arg1: i32) -> (i32, i32) {
    %c0_i32 = arith.constant 0 : i32
    %c0_i32_0 = arith.constant 0 : i32
    %c0_i32_1 = arith.constant 0 : i32
    return %c0_i32, %c0_i32_0 : i32, i32
  }
  func.func @transform_5(%arg0: i32, %arg1: i32) -> (i32, i32, i32) {
    %c0_i32 = arith.constant 0 : i32
    %c0_i32_0 = arith.constant 0 : i32
    return %arg0, %arg1, %c0_i32 : i32, i32, i32
  }
}

</mosaic_0001>

<bundles_post_ra>
// kernel: tpu_custom_call.1
= control target key start
LH: loop header
LB: loop body
LE: loop exit
PB: predicated region body
PF: predicated region fallthrough
CT: control target
= control target key end

     0   :  { %10 = vsyncpa [#allocation3], 0  ;;  %s1943_s0 = inlined_call_operand.vmem [shape: f32[2,8,384], index: 0, kind: input, shape index: {}]   ;;  %s1944_s1 = inlined_call_operand.vmem [shape: f32[2,8,384], index: 1, kind: input, shape index: {}]   ;;  %s1945_s2 = inlined_call_operand.vmem [shape: f32[384,64], index: 2, kind: input, shape index: {}]   ;;  %s1946_s3 = inlined_call_operand.vmem [shape: f32[384,64], index: 3, kind: input, shape index: {}]   ;;  %s1947_s4 = inlined_call_operand.vmem [shape: f32[384,64], index: 4, kind: input, shape index: {}]   ;;  %s1948_s5 = inlined_call_operand.hbm [shape: f32[2,8,64], index: 5, kind: output, shape index: {}]  }
   0x1   :  { %12 = vsyncpa [#allocation3 + $0x1], 0  ;;  %s1323_s18 = smov 0   ;;  %s1325_s19 = smov 0  }
   0x2   :  { %s1327_s20 = smov 0   ;;  %s1329_s21 = smov 0  }
   0x3   :  { %s1331_s22 = smov 0   ;;  %s1333_s23 = smov 0  }
   0x4 LB: > { %s965_s24 = sadd.s32 4294967295, %s1288_s23   ;;  %s966_s25 = sadd.s32 4294967294, %s1288_s23   ;;  %s1288_s23 = sphi %s1333_s23, %s18_s23   ;;  %s1284_s22 = sphi %s1331_s22, %s1955_s22   ;;  %s1280_s21 = sphi %s1329_s21, %s1954_s21   ;;  %s1276_s20 = sphi %s1327_s20, %s1953_s20   ;;  %s1272_s19 = sphi %s1325_s19, %s1952_s19   ;;  %s1268_s18 = sphi %s1323_s18, %s1951_s18  }
   0x5   : > { %s30_s26 = sadd.s32 1, %s1284_s22  ;;  %s156_s27 = sadd.s32 1, %s1276_s20 }
   0x6   : > { %p32_p0 = scmp.ge.s32.totalorder %s30_s26, 2  ;;  %p166_p1 = scmp.ne.s32.totalorder %s1276_s20, %s1272_s19 }
   0x7   : > { %p167_p2 = scmp.eq.s32.totalorder %s965_s24, 1  ;;  %p172_p3 = scmp.ne.s32.totalorder %s1272_s19, %s1268_s18 }
   0x8   : > { %s1957_s26 = smov (%p32_p0, %s30_s26), 0  ;;  %p173_p5 = scmp.eq.s32.totalorder %s966_s25, 1 }
   0x9   : > { %p1363_p4 = por %p167_p2, %p166_p1  ;;  %s151_s29 = ssub.s32 %s1284_s22, %s1957_s26 }
   0xa   : > { %p969_p6 = scmp.ge.s32.totalorder %s1288_s23, 1  ;;  %p154_p7 = scmp.eq.s32.totalorder %s151_s29, 0 }
   0xb   : > { %p1370_p8 = por %p173_p5, %p172_p3  ;;  %p220_p9 = scmp.lt.s32.totalorder %s1288_s23, 3 }
   0xc   : > { %s1376_s6 = scalar_select %p154_p7, %s1276_s20, %s156_s27  }
   0xd   : > { %p221_p10 = pnand %p969_p6, %p220_p9 }
   0xe   : > { %v300_v0 = vld [vmem:[%s1945_s2 + $0x80] sm:$0xff] (!%p221_p10)  ;;  %v301_v1 = vld [vmem:[%s1945_s2 + $0x88] sm:$0xff] (!%p221_p10)  ;;  %v1290_v4 = vmov (!%p221_p10), 0.0   ;;  %p257_p11 = scmp.lt.s32.totalorder (!%p221_p10), %s1280_s21, 1  ;;  %vm1291_vm0 = vmmov (!%p221_p10), 0   ;;  %v302_v10 = vld [vmem:[%s1945_s2 + $0x90] sm:$0xff] (!%p221_p10) }
   0xf   : > { %224 = sbr.rel (%p221_p10) target bundleno = 909 (0x38d), region = 40  ;;  %v284_v2 = vld [vmem:[%s1945_s2] sm:$0xff] (!%p221_p10)  ;;  %v340_v3 = vpack.c.bf16 (!%p221_p10), %v301_v1, %v300_v0  ;;  %1076 = vmatprep.subr.bf16.mxu1 (!%p221_p10), %v1290_v4  ;;  %v285_v5 = vld [vmem:[%s1945_s2 + $0x8] sm:$0xff] (!%p221_p10)  ;;  %1092 = vmatprep.mubr.msk.bf16.mxu1 (!%p221_p10), %vm1291_vm0, %v1290_v4  ;;  %v303_v11 = vld [vmem:[%s1945_s2 + $0x98] sm:$0xff] (!%p221_p10)  ;;  %vm743_vm1 = vcmask (!%p221_p10), 523264   ;;  %vm814_vm2 = vcmask (!%p221_p10), 1043456  }
  0x10   : > { %v316_v6 = vld [vmem:[%s1945_s2 + $0x100] sm:$0xff] (!%p221_p10)  ;;  %v317_v7 = vld [vmem:[%s1945_s2 + $0x108] sm:$0xff] (!%p221_p10)  ;;  %v332_v8 = vpack.c.bf16 (!%p221_p10), %v285_v5, %v284_v2  ;;  %v286_v12 = vld [vmem:[%s1945_s2 + $0x10] sm:$0xff] (!%p221_p10)  ;;  %v341_v13 = vpack.c.bf16 (!%p221_p10), %v303_v11, %v302_v10  ;;  %vm799_vm4 = vcmask (!%p221_p10), 64512   ;;  %s254_s7 = sand.u32 (!%p221_p10), 1, %s1272_s19   ;;  %s976_s9 = sshll.u32 (!%p221_p10), %s1280_s21, 7 }
  0x11   : > { %v348_v9 = vpack.c.bf16 (!%p221_p10), %v317_v7, %v316_v6  ;;  %979 = vmatprep.subr.bf16.mxu0 (!%p221_p10), %v340_v3  ;;  %v287_v14 = vld [vmem:[%s1945_s2 + $0x18] sm:$0xff] (!%p221_p10)  ;;  %v318_v15 = vld [vmem:[%s1945_s2 + $0x110] sm:$0xff] (!%p221_p10)  ;;  %v304_v19 = vld [vmem:[%s1945_s2 + $0xa0] sm:$0xff] (!%p221_p10)  ;;  %s970_s8 = sshll.u32 (!%p221_p10), %s254_s7, 3 }
  0x12   : > { %v319_v16 = vld [vmem:[%s1945_s2 + $0x118] sm:$0xff] (!%p221_p10)  ;;  %980 = vmatpush3.bf16.msra.mxu0 (!%p221_p10), %v332_v8  ;;  %v333_v17 = vpack.c.bf16 (!%p221_p10), %v287_v14, %v286_v12  ;;  %v305_v20 = vld [vmem:[%s1945_s2 + $0xa8] sm:$0xff] (!%p221_p10)  ;;  %v288_v21 = vld [vmem:[%s1945_s2 + $0x20] sm:$0xff] (!%p221_p10) }
  0x13   : > { %1077 = vmatpush3.bf16.msra.mxu1 (!%p221_p10), %v348_v9  ;;  %v349_v18 = vpack.c.bf16 (!%p221_p10), %v319_v16, %v318_v15  ;;  %981 = vmatprep.subr.bf16.mxu0 (!%p221_p10), %v341_v13  ;;  %v342_v22 = vpack.c.bf16 (!%p221_p10), %v305_v20, %v304_v19  ;;  %v289_v23 = vld [vmem:[%s1945_s2 + $0x28] sm:$0xff] (!%p221_p10)  ;;  %v320_v24 = vld [vmem:[%s1945_s2 + $0x120] sm:$0xff] (!%p221_p10)  ;;  %v306_v26 = vld [vmem:[%s1945_s2 + $0xb0] sm:$0xff] (!%p221_p10) }
  0x14   : > { %1078 = vmatprep.subr.bf16.mxu1 (!%p221_p10), %v1290_v4  ;;  %v321_v25 = vld [vmem:[%s1945_s2 + $0x128] sm:$0xff] (!%p221_p10)  ;;  %v307_v27 = vld [vmem:[%s1945_s2 + $0xb8] sm:$0xff] (!%p221_p10)  ;;  %v334_v28 = vpack.c.bf16 (!%p221_p10), %v289_v23, %v288_v21  ;;  %v290_v30 = vld [vmem:[%s1945_s2 + $0x30] sm:$0xff] (!%p221_p10) }
  0x15   : > { %v350_v29 = vpack.c.bf16 (!%p221_p10), %v321_v25, %v320_v24  ;;  %v343_v31 = vpack.c.bf16 (!%p221_p10), %v307_v27, %v306_v26  ;;  %v291_v32 = vld [vmem:[%s1945_s2 + $0x38] sm:$0xff] (!%p221_p10)  ;;  %v322_v33 = vld [vmem:[%s1945_s2 + $0x130] sm:$0xff] (!%p221_p10)  ;;  %v308_v35 = vld [vmem:[%s1945_s2 + $0xc0] sm:$0xff] (!%p221_p10) }
  0x16   : > { %s1440_s13 = scalar_select %p257_p11, %s1280_s21, 1  ;;  %982 = vmatpush3.bf16.msra.mxu0 %v333_v17  ;;  %v323_v34 = vld [vmem:[%s1945_s2 + $0x138] sm:$0xff]  ;;  %v309_v36 = vld [vmem:[%s1945_s2 + $0xc8] sm:$0xff]  ;;  %v335_v37 = vpack.c.bf16 %v291_v32, %v290_v30  ;;  %v292_v39 = vld [vmem:[%s1945_s2 + $0x40] sm:$0xff] }
  0x17   : > { %1079 = vmatpush3.bf16.msra.mxu1 %v349_v18  ;;  %983 = vmatprep.subr.bf16.mxu0 %v342_v22  ;;  %v351_v38 = vpack.c.bf16 %v323_v34, %v322_v33  ;;  %v344_v40 = vpack.c.bf16 %v309_v36, %v308_v35  ;;  %v293_v41 = vld [vmem:[%s1945_s2 + $0x48] sm:$0xff]  ;;  %v324_v42 = vld [vmem:[%s1945_s2 + $0x140] sm:$0xff]  ;;  %v310_v44 = vld [vmem:[%s1945_s2 + $0xd0] sm:$0xff]  ;;  %s862_s21 = scalar_lea.sflag [#allocation3], %s254_s7 }
  0x18   : > { %1080 = vmatprep.subr.bf16.mxu1 %v1290_v4  ;;  %s1148_s11 = smul.u32 24, %s1440_s13  ;;  %v325_v43 = vld [vmem:[%s1945_s2 + $0x148] sm:$0xff]  ;;  %v311_v45 = vld [vmem:[%s1945_s2 + $0xd8] sm:$0xff]  ;;  %v336_v46 = vpack.c.bf16 %v293_v41, %v292_v39  ;;  %v294_v48 = vld [vmem:[%s1945_s2 + $0x50] sm:$0xff]  ;;  %s256_s13 = scalar_lea.vmem [#allocation2], %s970_s8 }
  0x19   : > { %v352_v47 = vpack.c.bf16 %v325_v43, %v324_v42  ;;  %v345_v50 = vpack.c.bf16 %v311_v45, %v310_v44  ;;  %v295_v51 = vld [vmem:[%s1945_s2 + $0x58] sm:$0xff]  ;;  %v326_v52 = vld [vmem:[%s1945_s2 + $0x150] sm:$0xff]  ;;  %v312_v55 = vld [vmem:[%s1945_s2 + $0xe0] sm:$0xff] }
  0x1a   : > { %984 = vmatpush3.bf16.msra.mxu0 %v334_v28  ;;  %s1486_s14 = scalar_lea.vmem %s1943_s0, %s1148_s11  ;;  %v327_v53 = vld [vmem:[%s1945_s2 + $0x158] sm:$0xff]  ;;  %v313_v56 = vld [vmem:[%s1945_s2 + $0xe8] sm:$0xff]  ;;  %v337_v57 = vpack.c.bf16 %v295_v51, %v294_v48  ;;  %v296_v59 = vld [vmem:[%s1945_s2 + $0x60] sm:$0xff]  ;;  %s1578_s27 = scalar_lea.vmem %s1944_s1, %s1148_s11 }
  0x1b   : > { %1081 = vmatpush3.bf16.msra.mxu1 %v350_v29  ;;  %985 = vmatprep.subr.bf16.mxu0 %v343_v31  ;;  %v273_v49 = vld [vmem:[%s1486_s14 + $0x8] sm:$0xff]  ;;  %v353_v58 = vpack.c.bf16 %v327_v53, %v326_v52  ;;  %v346_v60 = vpack.c.bf16 %v313_v56, %v312_v55  ;;  %v328_v62 = vld [vmem:[%s1945_s2 + $0x160] sm:$0xff]  ;;  %v314_v0 = vld [vmem:[%s1945_s2 + $0xf0] sm:$0xff]  ;;  %s876_s11 = sshll.u32 %s256_s13, 4  ;;  %s1897_s11 = int_to_ptr.vmem [resolvable:$true] %s876_s11 }
  0x1c   : > { %1082 = vmatprep.subr.bf16.mxu1 %v1290_v4  ;;  %v276_v54 = vpack.c.bf16 %v273_v49, %v273_v49  ;;  %v297_v61 = vld [vmem:[%s1945_s2 + $0x68] sm:$0xff]  ;;  %v315_v1 = vld [vmem:[%s1945_s2 + $0xf8] sm:$0xff]  ;;  %v298_v5 = vld [vmem:[%s1945_s2 + $0x70] sm:$0xff]  ;;  %s1210_s15 = scalar_lea.vmem %s1897_s11, 128 }
  0x1d   : > { %v329_v63 = vld [vmem:[%s1945_s2 + $0x168] sm:$0xff]  ;;  %v338_v2 = vpack.c.bf16 %v297_v61, %v296_v59  ;;  %v347_v6 = vpack.c.bf16 %v315_v1, %v314_v0  ;;  %v299_v7 = vld [vmem:[%s1945_s2 + $0x78] sm:$0xff]  ;;  %v330_v8 = vld [vmem:[%s1945_s2 + $0x170] sm:$0xff]  ;;  %p1211_p12 = scmp.ne.s32.totalorder %s1897_s11, %s1210_s15 }
  0x1e   : > { %986 = vmatpush3.bf16.msra.mxu0 %v335_v37  ;;  %532 = vmatprep.mubr.bf16.mxu0 %v276_v54  ;;  %v354_v3 = vpack.c.bf16 %v329_v63, %v328_v62  ;;  %v331_v9 = vld [vmem:[%s1945_s2 + $0x178] sm:$0xff]  ;;  %v372_v10 = vld [vmem:[%s1946_s3 + $0x80] sm:$0xff]  ;;  %v373_v11 = vld [vmem:[%s1946_s3 + $0x88] sm:$0xff]  ;;  %v339_v12 = vpack.c.bf16 %v299_v7, %v298_v5 }
  0x1f   : > { %1083 = vmatpush3.bf16.msra.mxu1 %v351_v38  ;;  %987 = vmatprep.subr.bf16.mxu0 %v344_v40  ;;  %v355_v13 = vpack.c.bf16 %v331_v9, %v330_v8  ;;  %v272_v14 = vld [vmem:[%s1486_s14] sm:$0xff]  ;;  %v274_v15 = vld [vmem:[%s1486_s14 + $0x10] sm:$0xff]  ;;  %v412_v17 = vpack.c.bf16 %v373_v11, %v372_v10  ;;  %v357_v18 = vld [vmem:[%s1946_s3 + $0x8] sm:$0xff]  ;;  %s1895_s14 = scalar_lea.hbm %s1948_s5, %s976_s9  ;;  %p1212_p13 = pnand %p1211_p12, %p1363_p4 }
  0x20   : > { %1084 = vmatprep.subr.bf16.mxu1 %v1290_v4  ;;  %v356_v16 = vld [vmem:[%s1946_s3] sm:$0xff]  ;;  %v389_v20 = vld [vmem:[%s1946_s3 + $0x108] sm:$0xff]  ;;  %v374_v21 = vld [vmem:[%s1946_s3 + $0x90] sm:$0xff]  ;;  %v275_v23 = vpack.c.bf16 %v272_v14, %v272_v14  ;;  %v277_v24 = vpack.c.bf16 %v274_v15, %v274_v15 }
  0x21   : > { %v388_v19 = vld [vmem:[%s1946_s3 + $0x100] sm:$0xff]  ;;  %v375_v22 = vld [vmem:[%s1946_s3 + $0x98] sm:$0xff]  ;;  %v404_v25 = vpack.c.bf16 %v357_v18, %v356_v16  ;;  %v358_v27 = vld [vmem:[%s1946_s3 + $0x10] sm:$0xff]  ;;  %p1213_p0 = pneg %p1212_p13 }
  0x22   : > { %988 = vmatpush3.bf16.msra.mxu0 %v336_v46  ;;  %v420_v26 = vpack.c.bf16 %v389_v20, %v388_v19  ;;  %v359_v28 = vld [vmem:[%s1946_s3 + $0x18] sm:$0xff]  ;;  %v413_v29 = vpack.c.bf16 %v375_v22, %v374_v21  ;;  %v390_v30 = vld [vmem:[%s1946_s3 + $0x110] sm:$0xff]  ;;  %v279_v32 = vld [vmem:[%s1578_s27 + $0x8] sm:$0xff] }
  0x23   : > { %1085 = vmatpush3.bf16.msra.mxu1 %v352_v47  ;;  %989 = vmatprep.subr.bf16.mxu0 %v345_v50  ;;  %v391_v31 = vld [vmem:[%s1946_s3 + $0x118] sm:$0xff]  ;;  %v376_v33 = vld [vmem:[%s1946_s3 + $0xa0] sm:$0xff]  ;;  %v377_v34 = vld [vmem:[%s1946_s3 + $0xa8] sm:$0xff]  ;;  %v1600_v35 = vpack.c.bf16 %v279_v32, %v279_v32  ;;  %v405_v36 = vpack.c.bf16 %v359_v28, %v358_v27 }
  0x24   : > { %1086 = vmatprep.subr.bf16.mxu1 %v1290_v4  ;;  %v421_v37 = vpack.c.bf16 %v391_v31, %v390_v30  ;;  %v360_v38 = vld [vmem:[%s1946_s3 + $0x20] sm:$0xff]  ;;  %v414_v39 = vpack.c.bf16 %v377_v34, %v376_v33  ;;  %v361_v40 = vld [vmem:[%s1946_s3 + $0x28] sm:$0xff]  ;;  %v378_v43 = vld [vmem:[%s1946_s3 + $0xb0] sm:$0xff] }
  0x25   : > { %v392_v41 = vld [vmem:[%s1946_s3 + $0x120] sm:$0xff]  ;;  %v393_v42 = vld [vmem:[%s1946_s3 + $0x128] sm:$0xff]  ;;  %v379_v44 = vld [vmem:[%s1946_s3 + $0xb8] sm:$0xff]  ;;  %v406_v45 = vpack.c.bf16 %v361_v40, %v360_v38 }
  0x26   : > { %990 = vmatpush3.bf16.msra.mxu0 %v337_v57  ;;  %v422_v46 = vpack.c.bf16 %v393_v42, %v392_v41  ;;  %v362_v47 = vld [vmem:[%s1946_s3 + $0x30] sm:$0xff]  ;;  %v415_v48 = vpack.c.bf16 %v379_v44, %v378_v43  ;;  %v363_v49 = vld [vmem:[%s1946_s3 + $0x38] sm:$0xff]  ;;  %v380_v52 = vld [vmem:[%s1946_s3 + $0xc0] sm:$0xff] }
  0x27   : > { %1087 = vmatpush3.bf16.msra.mxu1 %v353_v58  ;;  %991 = vmatprep.subr.bf16.mxu0 %v346_v60  ;;  %v394_v50 = vld [vmem:[%s1946_s3 + $0x130] sm:$0xff]  ;;  %v395_v51 = vld [vmem:[%s1946_s3 + $0x138] sm:$0xff]  ;;  %v381_v53 = vld [vmem:[%s1946_s3 + $0xc8] sm:$0xff]  ;;  %v407_v54 = vpack.c.bf16 %v363_v49, %v362_v47 }
  0x28   : > { %1088 = vmatprep.subr.bf16.mxu1 %v1290_v4  ;;  %v423_v55 = vpack.c.bf16 %v395_v51, %v394_v50  ;;  %v364_v56 = vld [vmem:[%s1946_s3 + $0x40] sm:$0xff]  ;;  %v416_v57 = vpack.c.bf16 %v381_v53, %v380_v52  ;;  %v365_v58 = vld [vmem:[%s1946_s3 + $0x48] sm:$0xff]  ;;  %v382_v61 = vld [vmem:[%s1946_s3 + $0xd0] sm:$0xff] }
  0x29   : > { %v396_v59 = vld [vmem:[%s1946_s3 + $0x140] sm:$0xff]  ;;  %v397_v60 = vld [vmem:[%s1946_s3 + $0x148] sm:$0xff]  ;;  %v383_v62 = vld [vmem:[%s1946_s3 + $0xd8] sm:$0xff]  ;;  %v408_v63 = vpack.c.bf16 %v365_v58, %v364_v56 }
  0x2a   : > { %992 = vmatpush3.bf16.msra.mxu0 %v338_v2  ;;  %v424_v0 = vpack.c.bf16 %v397_v60, %v396_v59  ;;  %v366_v1 = vld [vmem:[%s1946_s3 + $0x50] sm:$0xff]  ;;  %v417_v2 = vpack.c.bf16 %v383_v62, %v382_v61  ;;  %v384_v7 = vld [vmem:[%s1946_s3 + $0xe0] sm:$0xff]  ;;  %v385_v8 = vld [vmem:[%s1946_s3 + $0xe8] sm:$0xff] }
  0x2b   : > { %1089 = vmatpush3.bf16.msra.mxu1 %v354_v3  ;;  %993 = vmatprep.subr.bf16.mxu0 %v347_v6  ;;  %v367_v3 = vld [vmem:[%s1946_s3 + $0x58] sm:$0xff]  ;;  %v398_v5 = vld [vmem:[%s1946_s3 + $0x150] sm:$0xff]  ;;  %v368_v11 = vld [vmem:[%s1946_s3 + $0x60] sm:$0xff] }
  0x2c   : > { %1090 = vmatprep.subr.bf16.mxu1 %v1290_v4  ;;  %v399_v6 = vld [vmem:[%s1946_s3 + $0x158] sm:$0xff]  ;;  %v409_v9 = vpack.c.bf16 %v367_v3, %v366_v1  ;;  %v400_v14 = vld [vmem:[%s1946_s3 + $0x160] sm:$0xff]  ;;  %v401_v15 = vld [vmem:[%s1946_s3 + $0x168] sm:$0xff] }
  0x2d   : > { %v425_v10 = vpack.c.bf16 %v399_v6, %v398_v5  ;;  %v386_v16 = vld [vmem:[%s1946_s3 + $0xf0] sm:$0xff]  ;;  %v426_v19 = vpack.c.bf16 %v401_v15, %v400_v14  ;;  %v371_v22 = vld [vmem:[%s1946_s3 + $0x78] sm:$0xff]  ;;  %v278_v27 = vld [vmem:[%s1578_s27] sm:$0xff] }
  0x2e   : > { %994 = vmatpush3.bf16.msra.mxu0 %v339_v12  ;;  %v418_v12 = vpack.c.bf16 %v385_v8, %v384_v7  ;;  %v370_v20 = vld [vmem:[%s1946_s3 + $0x70] sm:$0xff]  ;;  %v444_v31 = vld [vmem:[%s1947_s4 + $0x80] sm:$0xff]  ;;  %v445_v32 = vld [vmem:[%s1947_s4 + $0x88] sm:$0xff] }
  0x2f   : > { %1091 = vmatpush3.bf16.msra.mxu1 %v355_v13  ;;  %1010 = vmatprep.subr.bf16.mxu0 %v412_v17  ;;  %v369_v13 = vld [vmem:[%s1946_s3 + $0x68] sm:$0xff]  ;;  %v387_v17 = vld [vmem:[%s1946_s3 + $0xf8] sm:$0xff]  ;;  %v280_v28 = vld [vmem:[%s1578_s27 + $0x10] sm:$0xff]  ;;  %v484_v33 = vpack.c.bf16 %v445_v32, %v444_v31  ;;  %s1292_s27 = smov [#allocation2]  }
  0x30   : > { %1096 = vmatprep.subr.bf16.mxu1 %v1290_v4  ;;  %v410_v18 = vpack.c.bf16 %v369_v13, %v368_v11  ;;  %v419_v21 = vpack.c.bf16 %v387_v17, %v386_v16  ;;  %v1718_v30 = vpack.c.bf16 %v280_v28, %v280_v28  ;;  %v428_v34 = vld [vmem:[%s1947_s4] sm:$0xff]  ;;  %v447_v38 = vld [vmem:[%s1947_s4 + $0x98] sm:$0xff]  ;;  %v430_v40 = vld [vmem:[%s1947_s4 + $0x10] sm:$0xff]  ;;  %s1214_s16 = sshll.u32 %s1292_s27, 4  ;;  %s1215_s16 = int_to_ptr.vmem [resolvable:$false] %s1214_s16 }
  0x31   : > { %533 = vmatmul.mubr.bf16.vlgmr.msra.gmra.mrb[0].mxu0 %v275_v23  ;;  %v402_v23 = vld [vmem:[%s1946_s3 + $0x170] sm:$0xff]  ;;  %v431_v41 = vld [vmem:[%s1947_s4 + $0x18] sm:$0xff]  ;;  %v448_v43 = vld [vmem:[%s1947_s4 + $0xa0] sm:$0xff]  ;;  %s1216_s17 = scalar_lea.vmem %s1215_s16, 256  ;;  %p1217_p1 = scmp.lt.s32.totalorder %s1897_s11, %s1215_s16 }
  0x32   : > { %1093 = vmatmul.mubr.bf16.vlgmr.msra.gmra.mrb[0].mxu1 %v277_v24  ;;  %1011 = vmatpush3.bf16.msra.mxu0 %v404_v25  ;;  %v403_v24 = vld [vmem:[%s1946_s3 + $0x178] sm:$0xff]  ;;  %v411_v25 = vpack.c.bf16 %v371_v22, %v370_v20  ;;  %v477_v42 = vpack.c.bf16 %v431_v41, %v430_v40  ;;  %v449_v44 = vld [vmem:[%s1947_s4 + $0xa8] sm:$0xff]  ;;  %v450_v52 = vld [vmem:[%s1947_s4 + $0xb0] sm:$0xff]  ;;  %p1218_p2 = scmp.lt.s32.totalorder %s1216_s17, %s1210_s15 }
  0x33   : > { %1097 = vmatpush3.bf16.msra.mxu1 %v420_v26  ;;  %1012 = vmatprep.subr.bf16.mxu0 %v413_v29  ;;  %v427_v26 = vpack.c.bf16 %v403_v24, %v402_v23  ;;  %v1716_v29 = vpack.c.bf16 %v278_v27, %v278_v27  ;;  %v433_v47 = vld [vmem:[%s1947_s4 + $0x28] sm:$0xff]  ;;  %v451_v53 = vld [vmem:[%s1947_s4 + $0xb8] sm:$0xff]  ;;  %v452_v61 = vld [vmem:[%s1947_s4 + $0xc0] sm:$0xff] }
  0x34   : > { %1098 = vmatprep.subr.bf16.mxu1 %v1290_v4  ;;  %613 = vmatprep.mubr.bf16.mxu0 %v1600_v35  ;;  %v461_v49 = vld [vmem:[%s1947_s4 + $0x108] sm:$0xff]  ;;  %v435_v56 = vld [vmem:[%s1947_s4 + $0x38] sm:$0xff]  ;;  %v454_v5 = vld [vmem:[%s1947_s4 + $0xd0] sm:$0xff]  ;;  %p1219_p3 = por %p1218_p2, %p1217_p1 }
  0x35   : > { %1112 = vmatprep.mubr.msk.bf16.mxu1 %vm1291_vm0, %v1290_v4  ;;  %v463_v58 = vld [vmem:[%s1947_s4 + $0x118] sm:$0xff]  ;;  %v453_v62 = vld [vmem:[%s1947_s4 + $0xc8] sm:$0xff]  ;;  %v456_v14 = vld [vmem:[%s1947_s4 + $0xe0] sm:$0xff] }
  0x36   : > { %1013 = vmatpush3.bf16.msra.mxu0 %v405_v36  ;;  %v437_v1 = vld [vmem:[%s1947_s4 + $0x48] sm:$0xff]  ;;  %v455_v6 = vld [vmem:[%s1947_s4 + $0xd8] sm:$0xff]  ;;  %v458_v23 = vld [vmem:[%s1947_s4 + $0xf0] sm:$0xff]  ;;  %p1220_p5 = pnand %p1219_p3, %p1213_p0 }
  0x37   : > { %1099 = vmatpush3.bf16.msra.mxu1 %v421_v37  ;;  %1014 = vmatprep.subr.bf16.mxu0 %v414_v39  ;;  %v446_v37 = vld [vmem:[%s1947_s4 + $0x90] sm:$0xff]  ;;  %v465_v3 = vld [vmem:[%s1947_s4 + $0x128] sm:$0xff]  ;;  %v439_v11 = vld [vmem:[%s1947_s4 + $0x58] sm:$0xff] }
  0x38   : > { %1100 = vmatprep.subr.bf16.mxu1 %v1290_v4  ;;  %v485_v39 = vpack.c.bf16 %v447_v38, %v446_v37  ;;  %v467_v13 = vld [vmem:[%s1947_s4 + $0x138] sm:$0xff]  ;;  %v457_v15 = vld [vmem:[%s1947_s4 + $0xe8] sm:$0xff]  ;;  %v470_v28 = vld [vmem:[%s1947_s4 + $0x150] sm:$0xff] }
  0x39   : > { %v441_v20 = vld [vmem:[%s1947_s4 + $0x68] sm:$0xff]  ;;  %v459_v24 = vld [vmem:[%s1947_s4 + $0xf8] sm:$0xff]  ;;  %v442_v32 = vld [vmem:[%s1947_s4 + $0x70] sm:$0xff] }
  0x3a   : > { %1015 = vmatpush3.bf16.msra.mxu0 %v406_v45  ;;  %v432_v45 = vld [vmem:[%s1947_s4 + $0x20] sm:$0xff]  ;;  %v469_v22 = vld [vmem:[%s1947_s4 + $0x148] sm:$0xff]  ;;  %v491_v27 = vpack.c.bf16 %v459_v24, %v458_v23  ;;  %v471_v31 = vld [vmem:[%s1947_s4 + $0x158] sm:$0xff] }
  0x3b   : > { %1101 = vmatpush3.bf16.msra.mxu1 %v422_v46  ;;  %1016 = vmatprep.subr.bf16.mxu0 %v415_v48  ;;  %v486_v46 = vpack.c.bf16 %v449_v44, %v448_v43  ;;  %v460_v48 = vld [vmem:[%s1947_s4 + $0x100] sm:$0xff]  ;;  %v478_v50 = vpack.c.bf16 %v433_v47, %v432_v45  ;;  %v473_v37 = vld [vmem:[%s1947_s4 + $0x168] sm:$0xff]  ;;  %v475_v40 = vld [vmem:[%s1947_s4 + $0x178] sm:$0xff] }
  0x3c   : > { %1102 = vmatprep.subr.bf16.mxu1 %v1290_v4  ;;  %v492_v51 = vpack.c.bf16 %v461_v49, %v460_v48 }
  0x3e   : > { %1017 = vmatpush3.bf16.msra.mxu0 %v407_v54  ;;  %v434_v54 = vld [vmem:[%s1947_s4 + $0x30] sm:$0xff] }
  0x3f   : > { %1103 = vmatpush3.bf16.msra.mxu1 %v423_v55  ;;  %1018 = vmatprep.subr.bf16.mxu0 %v416_v57  ;;  %v487_v55 = vpack.c.bf16 %v451_v53, %v450_v52  ;;  %v462_v57 = vld [vmem:[%s1947_s4 + $0x110] sm:$0xff]  ;;  %v479_v59 = vpack.c.bf16 %v435_v56, %v434_v54 }
  0x40   : > { %1104 = vmatprep.subr.bf16.mxu1 %v1290_v4  ;;  %v493_v60 = vpack.c.bf16 %v463_v58, %v462_v57 }
  0x42   : > { %1019 = vmatpush3.bf16.msra.mxu0 %v408_v63  ;;  %v436_v63 = vld [vmem:[%s1947_s4 + $0x40] sm:$0xff] }
  0x43   : > { %1105 = vmatpush3.bf16.msra.mxu1 %v424_v0  ;;  %1020 = vmatprep.subr.bf16.mxu0 %v417_v2  ;;  %v488_v0 = vpack.c.bf16 %v453_v62, %v452_v61  ;;  %v464_v2 = vld [vmem:[%s1947_s4 + $0x120] sm:$0xff]  ;;  %v480_v7 = vpack.c.bf16 %v437_v1, %v436_v63 }
  0x44   : > { %1106 = vmatprep.subr.bf16.mxu1 %v1290_v4  ;;  %v494_v8 = vpack.c.bf16 %v465_v3, %v464_v2 }
  0x46   : > { %1021 = vmatpush3.bf16.msra.mxu0 %v409_v9  ;;  %v438_v9 = vld [vmem:[%s1947_s4 + $0x50] sm:$0xff] }
  0x47   : > { %1107 = vmatpush3.bf16.msra.mxu1 %v425_v10  ;;  %1022 = vmatprep.subr.bf16.mxu0 %v418_v12  ;;  %v489_v10 = vpack.c.bf16 %v455_v6, %v454_v5  ;;  %v466_v12 = vld [vmem:[%s1947_s4 + $0x130] sm:$0xff]  ;;  %v481_v16 = vpack.c.bf16 %v439_v11, %v438_v9 }
  0x48   : > { %1108 = vmatprep.subr.bf16.mxu1 %v1290_v4  ;;  %v495_v17 = vpack.c.bf16 %v467_v13, %v466_v12  ;;  %v791_v12 = vlaneseq }
  0x4a   : > { %1023 = vmatpush3.bf16.msra.mxu0 %v410_v18  ;;  %v440_v18 = vld [vmem:[%s1947_s4 + $0x60] sm:$0xff]  ;;  %v792_v13 = vshrl.u32 %v791_v12, 7 }
  0x4b   : > { %1109 = vmatpush3.bf16.msra.mxu1 %v426_v19  ;;  %1024 = vmatprep.subr.bf16.mxu0 %v419_v21  ;;  %v490_v19 = vpack.c.bf16 %v457_v15, %v456_v14  ;;  %v468_v21 = vld [vmem:[%s1947_s4 + $0x140] sm:$0xff]  ;;  %v796_v14 = vand.u32 127, %v791_v12 }
  0x4c   : > { %1110 = vmatprep.subr.bf16.mxu1 %v1290_v4 }
  0x4d   : > { %vm797_vm3 = vcmp.le.s32.totalorder %v796_v14, %v792_v13 }
  0x4e   : > { %1025 = vmatpush3.bf16.msra.mxu0 %v411_v25  ;;  %v482_v25 = vpack.c.bf16 %v441_v20, %v440_v18 }
  0x4f   : > { %1111 = vmatpush3.bf16.msra.mxu1 %v427_v26  ;;  %1041 = vmatprep.subr.bf16.mxu0 %v484_v33  ;;  %v496_v26 = vpack.c.bf16 %v469_v22, %v468_v21  ;;  %v443_v33 = vld [vmem:[%s1947_s4 + $0x78] sm:$0xff] }
  0x50   : > { %1116 = vmatprep.subr.bf16.mxu1 %v1290_v4 }
  0x51   : > { %614 = vmatmul.mubr.bf16.vlgmr.msra.gmra.mrb[4].mxu0 %v1716_v29 }
  0x52   : > { %1113 = vmatmul.mubr.bf16.vlgmr.msra.gmra.mrb[4].mxu1 %v1718_v30  ;;  %693 = vmatprep.mubr.bf16.mxu0 %v1600_v35  ;;  %v429_v35 = vld [vmem:[%s1947_s4 + $0x8] sm:$0xff] }
  0x53   : > { %1132 = vmatprep.mubr.msk.bf16.mxu1 %vm1291_vm0, %v1290_v4  ;;  %v476_v36 = vpack.c.bf16 %v429_v35, %v428_v34  ;;  %1117 = vmatpush3.bf16.msra.mxu1 %v492_v51  ;;  %v497_v34 = vpack.c.bf16 %v471_v31, %v470_v28  ;;  %v483_v35 = vpack.c.bf16 %v443_v33, %v442_v32 }
  0x54   : > { %1118 = vmatprep.subr.bf16.mxu1 %v1290_v4 }
  0x55   : > { %1042 = vmatpush3.bf16.msra.mxu0 %v476_v36  ;;  %v472_v36 = vld [vmem:[%s1947_s4 + $0x160] sm:$0xff] }
  0x56   : > { %1043 = vmatprep.subr.bf16.mxu0 %v485_v39  ;;  %v498_v38 = vpack.c.bf16 %v473_v37, %v472_v36  ;;  %v474_v39 = vld [vmem:[%s1947_s4 + $0x170] sm:$0xff] }
  0x57   : > { %1119 = vmatpush3.bf16.msra.mxu1 %v493_v60  ;;  %v499_v41 = vpack.c.bf16 %v475_v40, %v474_v39 }
  0x58   : > { %1120 = vmatprep.subr.bf16.mxu1 %v1290_v4 }
  0x59   : > { %1044 = vmatpush3.bf16.msra.mxu0 %v477_v42 }
  0x5a   : > { %1045 = vmatprep.subr.bf16.mxu0 %v486_v46 }
  0x5b   : > { %1121 = vmatpush3.bf16.msra.mxu1 %v494_v8 }
  0x5c   : > { %1122 = vmatprep.subr.bf16.mxu1 %v1290_v4 }
  0x5d   : > { %1046 = vmatpush3.bf16.msra.mxu0 %v478_v50 }
  0x5e   : > { %1047 = vmatprep.subr.bf16.mxu0 %v487_v55 }
  0x5f   : > { %1123 = vmatpush3.bf16.msra.mxu1 %v495_v17 }
  0x60   : > { %1124 = vmatprep.subr.bf16.mxu1 %v1290_v4 }
  0x61   : > { %1048 = vmatpush3.bf16.msra.mxu0 %v479_v59 }
  0x62   : > { %1049 = vmatprep.subr.bf16.mxu0 %v488_v0 }
  0x63   : > { %1125 = vmatpush3.bf16.msra.mxu1 %v496_v26 }
  0x64   : > { %1126 = vmatprep.subr.bf16.mxu1 %v1290_v4 }
  0x65   : > { %1050 = vmatpush3.bf16.msra.mxu0 %v480_v7 }
  0x66   : > { %1051 = vmatprep.subr.bf16.mxu0 %v489_v10 }
  0x67   : > { %1127 = vmatpush3.bf16.msra.mxu1 %v497_v34 }
  0x68   : > { %1128 = vmatprep.subr.bf16.mxu1 %v1290_v4 }
  0x69   : > { %1052 = vmatpush3.bf16.msra.mxu0 %v481_v16 }
  0x6a   : > { %1053 = vmatprep.subr.bf16.mxu0 %v490_v19 }
  0x6b   : > { %1129 = vmatpush3.bf16.msra.mxu1 %v498_v38 }
  0x6c   : > { %1130 = vmatprep.subr.bf16.mxu1 %v1290_v4 }
  0x6d   : > { %1054 = vmatpush3.bf16.msra.mxu0 %v482_v25 }
  0x6e   : > { %1055 = vmatprep.subr.bf16.mxu0 %v491_v27 }
  0x6f   : > { %1131 = vmatpush3.bf16.msra.mxu1 %v499_v41 }
  0x70   : > { %1142 = vmatprep.subr.bf16.mxu1 %v1290_v4 }
  0x71   : > { %1056 = vmatpush3.bf16.msra.mxu0 %v483_v35 }
  0x72   : > { %1136 = vmatprep.subr.bf16.mxu0 %v1290_v4  ;;  %1133 = vmatmul.mubr.bf16.vlgmr.msra.gmra.mrb[8].mxu1 %v1718_v30 }
  0x73   : > { %1144 = vmatprep.mubr.msk.bf16.mxu1 %vm1291_vm0, %v1290_v4 }
  0x74   : > { %694 = vmatmul.mubr.bf16.vlgmr.msra.gmra.mrb[8].mxu0 %v1716_v29 }
  0x75   : > { %1138 = vmatprep.mubr.msk.bf16.mxu0 %vm1291_vm0, %v1290_v4 }
 0x104   : > { %v995_v29 = vpop.f32.mrb[0].mxu0 }
 0x105   : > { %v574_v42 = vpop.f32.mrb[0].mxu1  ;;  %v996_v43 = vpop.f32.mrb[1].mxu0 }
 0x106   : > { %v1094_v44 = vpop.f32.mrb[1].mxu1  ;;  %v997_v45 = vadd.f32 %v996_v43, %v995_v29  ;;  %v998_v46 = vpop.f32.mrb[2].mxu0 }
 0x107   : > { %v577_v47 = vpop.f32.mrb[2].mxu1  ;;  %v999_v48 = vpop.f32.mrb[3].mxu0 }
 0x108   : > { %v1095_v49 = vpop.f32.mrb[3].mxu1  ;;  %v575_v50 = vadd.f32 %v997_v45, %v574_v42 }
 0x10a   : > { %v580_v61 = vmul.f32 0.125, %v575_v50 }
 0x10c   : > { %v741_v62 = vpack.c.bf16 %v580_v61, %v580_v61 }
 0x124   : > { %v1026_v51 = vpop.f32.mrb[4].mxu0 }
 0x125   : > { %v655_v52 = vpop.f32.mrb[4].mxu1  ;;  %v1027_v53 = vpop.f32.mrb[5].mxu0 }
 0x126   : > { %v1114_v54 = vpop.f32.mrb[5].mxu1  ;;  %v1028_v55 = vadd.f32 %v1027_v53, %v1026_v51  ;;  %v1029_v56 = vpop.f32.mrb[6].mxu0 }
 0x127   : > { %v658_v30 = vpop.f32.mrb[6].mxu1  ;;  %v1030_v57 = vpop.f32.mrb[7].mxu0 }
 0x128   : > { %v1115_v58 = vpop.f32.mrb[7].mxu1  ;;  %v656_v4 = vadd.f32 %v1028_v55, %v655_v52 }
 0x12a   : > { %v742_v59 = vpack.c.bf16 %v656_v4, %v656_v4 }
 0x12c   : > { %v748_v60 = vsel %vm743_vm1, %v742_v59, 0 }
 0x12d   : > { %1137 = vmatpush3.bf16.xpose.msra.mxu0 %v748_v60 }
 0x134   : > { %1139 = vmatmul.mubr.msk.bf16.vlgmr.msra.gmra.mrb[12].mxu0 %vm743_vm1, %v741_v62 }
 0x145   : > { %v735_v5 = vpop.f32.mrb[8].mxu1 }
 0x146   : > { %v1134_v7 = vpop.f32.mrb[9].mxu1 }
 0x147   : > { %v1057_v63 = vpop.f32.mrb[8].mxu0  ;;  %v738_v8 = vpop.f32.mrb[10].mxu1 }
 0x148   : > { %v1058_v0 = vpop.f32.mrb[9].mxu0  ;;  %v1135_v10 = vpop.f32.mrb[11].mxu1 }
 0x149   : > { %v1059_v1 = vadd.f32 %v1058_v0, %v1057_v63  ;;  %v1060_v2 = vpop.f32.mrb[10].mxu0 }
 0x14a   : > { %v1061_v3 = vpop.f32.mrb[11].mxu0 }
 0x14b   : > { %v736_v6 = vadd.f32 %v1059_v1, %v735_v5 }
 0x14d   : > { %v810_v9 = vpack.c.bf16 %v736_v6, %v736_v6 }
 0x14f   : > { %v816_v11 = vsel %vm814_vm2, %v810_v9, 0 }
 0x150   : > { %1143 = vmatpush3.bf16.msra.mxu1 %v816_v11 }
 0x207   : > { %v784_v15 = vpop.f32.mrb[12].mxu0 }
 0x208   : > { %v798_v16 = vsel %vm797_vm3, %v784_v15, -inf  ;;  %v1140_v17 = vpop.f32.mrb[13].mxu0 }
 0x209   : > { %v787_v18 = vpop.f32.mrb[14].mxu0  ;;  %v800_v19 = vsel %vm799_vm4, %v798_v16, -inf }
 0x20a   : > { %801 = vmax.xlane.f32.xlu0 %v800_v19  ;;  %v1141_v20 = vpop.f32.mrb[15].mxu0 }
 0x297   : > { %v802_v21 = vpop.xlane.xlu0 %801 }
 0x298   : > { %v803_v22 = vsub.f32 %v798_v16, %v802_v21 }
 0x29a   : > { %v804_v23 = vmul.f32 1.442695, %v803_v22 }
 0x29c   : > { %1206 = vpow2.f32 %v804_v23 }
 0x2a6   : > { %v1207_v24 = vpop.eup %1206 }
 0x2a7   : > { %v806_v25 = vsel %vm799_vm4, %v1207_v24, 0.0  ;;  %v809_v26 = vpack.c.bf16 %v1207_v24, %v1207_v24 }
 0x2a8   : > { %807 = vadd.xlane.f32.xlu0 %v806_v25 }
 0x2a9   : > { %1145 = vmatmul.mubr.msk.bf16.vlgmr.msra.gmra.mrb[12].mxu1 %vm799_vm4, %v809_v26 }
 0x335   : > { %v808_v27 = vpop.xlane.xlu0 %807 }
 0x336   : > { %1208 = vrcp.f32 %v808_v27 }
 0x340   : > { %v1209_v28 = vpop.eup %1208 }
 0x37c   : > { %v852_v31 = vpop.f32.mrb[12].mxu1 }
 0x37d   : > { %v859_v32 = vmul.f32 %v1209_v28, %v852_v31  ;;  %v1146_v33 = vpop.f32.mrb[13].mxu1 }
 0x37e   : > { %v855_v34 = vpop.f32.mrb[14].mxu1 }
 0x37f   : > { %v1147_v35 = vpop.f32.mrb[15].mxu1  ;;  %860 = vst.msk [vmem:[%s256_s13] sm:$0xff] %vm743_vm1, %v859_v32 }
 0x380   : > { %1223 = shalt.err (!%p1220_p5)
}
 0x381   : > { %s1224_s24 = scalar_lea.hbm %s1895_s14, 128  ;;  %s1228_s7 = scalar_lea.hbm %s1948_s5, 256 }
 0x382   : > { %p1225_p6 = scmp.ne.s32.totalorder %s1895_s14, %s1224_s24  ;;  %p1229_p10 = scmp.lt.u32.totalorder %s1895_s14, %s1948_s5 }
 0x383   : > { %p1230_p11 = scmp.lt.u32.totalorder %s1228_s7, %s1224_s24  ;;  %p1232_p13 = scmp.lt.u32.totalorder %s1224_s24, %s1895_s14 }
 0x384   : > { %p1226_p7 = pnand %p1225_p6, %p1363_p4 }
 0x385   : > { %p1231_p12 = por %p1230_p11, %p1229_p10 }
 0x386   : > { %p1227_p9 = pneg %p1226_p7 }
 0x387   : > { %p1233_p0 = por %p1232_p13, %p1231_p12 }
 0x389   : > { %p1234_p1 = pnand %p1233_p0, %p1227_p9 }
 0x38b   : > { %1237 = shalt.err (!%p1234_p1)
}
 0x38c   : > { %1149 = dma.vmem_to_hbm [thread:$0]  (%p1363_p4), %s1897_s11, 128, %s1895_s14, %s862_s21  }
 0x38d PF: > { %p1155_p2 = scmp.ge.s32.totalorder %s1288_s23, 2  ;;  %s888_s13 = sand.u32 1, %s1268_s18  }
 0x38e   : > { %s889_s10 = scalar_lea.sflag [#allocation3], %s888_s13 }
 0x38f   : > { %p1152_p3 = pnand %p1155_p2, %p1370_p8 }
 0x391   : > { %1263 = dma.done.wait (!%p1152_p3), %s889_s10, 128  }
 0x392   : > { %1265 = vsyncadd (!%p1152_p3), %s889_s10, 4294967168  ;;  %s18_s23 = sadd.s32 1, %s1288_s23   ;;  %s1951_s18 = smov %s1272_s19 }
 0x393   : > { %p15_p5 = scmp.ge.s32.totalorder %s18_s23, 4   ;;  %s1952_s19 = smov %s1276_s20 }
 0x394   : > { %s1953_s20 = smov %s1376_s6  ;;  %s1954_s21 = smov %s1284_s22 }
 0x395   : > { %s1955_s22 = smov %s1957_s26  ;;  %17 = sbr.rel (!%p15_p5) target bundleno = 4 (0x4), region = 78 }
 0x39c   :  { %894 = vsyncpa [#allocation3], 1 }
 0x39d   :  { %896 = vsyncpa [#allocation3 + $0x1], 1 }

</bundles_post_ra>
